<compile_context>
chip_gen: v6e
topology: v6e:2x2x1
jax: 0.10.0
libtpu: 0.0.40
codegen_flags: <defaults>
</compile_context>

<pallas_src>
import functools
import math

import jax
import jax.numpy as jnp
from jax.experimental import pallas as pl
from jax.experimental.pallas import tpu as pltpu

_LN2 = math.log(2.0)


def _round_up(x, m):
    return (x + m - 1) // m * m


def _balanced_bce_kernel(logits_ref, labels_ref, out_ref, *,
                         n_rows, n_classes, grad_clip, mask_rows):
    tile_n, c_pad = logits_ref.shape

    x = logits_ref[...].astype(jnp.float32)        # (tile_n, c_pad)
    if grad_clip:
        x = jnp.clip(x, -14.0, 14.0)

    y_in = labels_ref[...]                         # native dtype (bf16 keeps HBM bytes low)
    y = y_in.astype(jnp.float32)

    # Per-row positive count on the (otherwise idle) MXU: labels @ ones gives a
    # (tile_n, 128) result in which every lane holds the row's positive count.
    # Zero-padded class columns contribute 0, so the count is exact.
    ones = jnp.ones((c_pad, 128), y_in.dtype)
    npos = jnp.dot(y_in, ones, preferred_element_type=jnp.float32)   # (tile_n, 128)
    alpha = jnp.where(npos == 0.0, 0.0,
                      (float(n_classes) - npos) / jnp.where(npos == 0.0, 1.0, npos))

    # Stable shared-softplus form (mathematically identical to the naive form):
    #   -log(sigmoid(x))     = max(-x, 0) + log(1 + exp(-|x|))
    #   -log(1 - sigmoid(x)) = max( x, 0) + log(1 + exp(-|x|))
    # (log(1 + z) with z in [1, 2] is well conditioned; abs error vs log1p is
    #  ~1e-7, negligible for a mean loss.)
    log_term = jnp.log(1.0 + jnp.exp(-jnp.abs(x)))
    term_pos = y * (jnp.maximum(-x, 0.0) + log_term)          # gets the alpha weight
    term_neg = (1.0 - y) * (jnp.maximum(x, 0.0) + log_term)

    # Lane fold (tile_n, c_pad) -> (tile_n, 128) on 128-aligned static slices.
    def fold_lanes(t):
        p = t[:, 0:128]
        for j in range(1, c_pad // 128):
            p = p + t[:, j * 128:(j + 1) * 128]
        return p

    # alpha applied AFTER the fold: no full-width broadcast / pos_weight temp.
    combined = fold_lanes(term_pos) * alpha + fold_lanes(term_neg)   # (tile_n, 128)

    if mask_rows:
        # Only edge tiles carry out-of-bounds (garbage) rows; mask them on the
        # narrow folded tensor (cheap) before they reach the sublane fold.
        i = pl.program_id(0)
        row_ids = i * tile_n + jax.lax.broadcasted_iota(jnp.int32, (tile_n, 128), 0)
        combined = jnp.where(row_ids < n_rows, combined, 0.0)

    # Sublane fold to a lane-dense (8, 128) partial using 4 interleaved
    # accumulators (breaks the single serial add chain).
    n8 = tile_n // 8
    n_acc = min(4, n8)
    accs = [combined[a * 8:(a + 1) * 8, :] for a in range(n_acc)]
    for g in range(n_acc, n8):
        a = g % n_acc
        accs[a] = accs[a] + combined[g * 8:(g + 1) * 8, :]
    part = accs[0]
    for a in range(1, n_acc):
        part = part + accs[a]
    out_ref[...] = part


def balanced_bce_with_logits_loss(logits, labels, *, grad_clip=False, tile_n=None):
    assert logits.shape == labels.shape, (
        "logits shape %r != labels shape %r" % (logits.shape, labels.shape))
    N, C = logits.shape

    # --- class (lane) dim: pad to a multiple of 128 ONLY when misaligned.
    # The padded columns' exact ln(2) contribution is removed analytically
    # below, so no in-kernel column mask is needed.
    c_pad = _round_up(max(C, 128), 128)
    if c_pad != C:
        logits = jnp.pad(logits, ((0, 0), (0, c_pad - C)))
        labels = jnp.pad(labels, ((0, 0), (0, c_pad - C)))

    # --- generation-dependent knobs (VMEM capacity drives block targets).
    try:
        vmem_cap = int(pltpu.get_tpu_info().vmem_capacity_bytes)
    except Exception:  # pragma: no cover - be conservative (v7x: 64 MiB / TC)
        vmem_cap = 64 << 20

    # --- row tile: >= 2 MiB f32 input block (4 MiB on 128-MiB-VMEM chips),
    # rows capped at 4096, multiple of 32 (safe for bf16/int8 sublane packing).
    if tile_n is None:
        target_block_bytes = (4 << 20) if vmem_cap >= (128 << 20) else (2 << 20)
        tile_n = max(32, min(4096, target_block_bytes // (c_pad * 4)))
    tile_n = _round_up(min(int(tile_n), _round_up(N, 32)), 32)

    num_tiles = int(pl.cdiv(N, tile_n))
    # v7x megacore: a 1-tile "parallel" grid leaves one TensorCore idle.
    while num_tiles < 2 and tile_n > 32 and N > 32:
        tile_n = _round_up(max(32, tile_n // 2), 32)
        num_tiles = int(pl.cdiv(N, tile_n))

    mask_rows = (N % tile_n) != 0   # no row padding: edge tiles masked in-kernel

    # --- VMEM budget from block size (double-buffered inputs + ~8 full-width
    # f32 elementwise temporaries + headroom), clamped below device capacity.
    in_block_bytes = tile_n * c_pad * (logits.dtype.itemsize + labels.dtype.itemsize)
    f32_block_bytes = tile_n * c_pad * 4
    vmem_need = 2 * in_block_bytes + 8 * f32_block_bytes + (4 << 20)
    vmem_limit = int(min(max(vmem_need, 16 << 20), vmem_cap - (8 << 20)))

    kernel = functools.partial(
        _balanced_bce_kernel, n_rows=N, n_classes=C,
        grad_clip=grad_clip, mask_rows=mask_rows)

    partials = pl.pallas_call(
        kernel,
        out_shape=jax.ShapeDtypeStruct((num_tiles * 8, 128), jnp.float32),
        grid_spec=pltpu.PrefetchScalarGridSpec(
            num_scalar_prefetch=0,
            grid=(num_tiles,),
            in_specs=[
                pl.BlockSpec((tile_n, c_pad), lambda i: (i, 0)),
                pl.BlockSpec((tile_n, c_pad), lambda i: (i, 0)),
            ],
            out_specs=pl.BlockSpec((8, 128), lambda i: (i, 0)),
        ),
        compiler_params=pltpu.CompilerParams(
            dimension_semantics=("parallel",),
            vmem_limit_bytes=vmem_limit,
        ),
    )(logits, labels)

    total = jnp.sum(partials)
    if c_pad != C:
        # Each zero-padded class element of a valid row (x = 0, y = 0, alpha
        # irrelevant since y = 0) contributes exactly ln 2; grad_clip keeps 0
        # at 0, so the correction is exact. Garbage (out-of-bounds) rows are
        # masked in-kernel and contribute nothing.
        total = total - jnp.float32(N * (c_pad - C) * _LN2)
    return total / jnp.float32(N * C)


def _reference(logits, labels, grad_clip=False):
    # Direct transcription of the PyTorch module (naive log(sigmoid) form).
    logits = logits.astype(jnp.float32)
    labels = labels.astype(jnp.float32)
    nc = labels.shape[1]
    npos = labels.sum(axis=1)
    alpha = jnp.where(npos == 0.0, 0.0,
                      (nc - npos) / jnp.where(npos == 0.0, 1.0, npos))
    pos_weight = labels * alpha[:, None]
    if grad_clip:
        logits = jnp.clip(logits, -14.0, 14.0)
    proba = jax.nn.sigmoid(logits)
    loss = -(jnp.log(proba) * pos_weight + jnp.log(1.0 - proba) * (1.0 - labels))
    return loss.mean()


if __name__ == "__main__":
    key = jax.random.PRNGKey(0)
    k1, k2, k3, k4 = jax.random.split(key, 4)

    # Case 1: bf16 binary labels (narrow-dtype HBM path, native bf16 MXU dot),
    # one all-zero-label row (exercises the inf -> 0 alpha path).
    N1, C1 = 16, 32
    logits1 = jax.random.normal(k1, (N1, C1), dtype=jnp.float32)
    labels1 = (jax.random.uniform(k2, (N1, C1)) < 0.3).astype(jnp.bfloat16)
    labels1 = labels1.at[0].set(0.0)
    out1 = jax.block_until_ready(
        balanced_bce_with_logits_loss(logits1, labels1, grad_clip=False))
    ref1 = _reference(logits1, labels1, grad_clip=False)
    assert jnp.allclose(out1, ref1, rtol=1e-5, atol=1e-5), (out1, ref1)

    # Case 2: f32 labels, shapes not divisible by 8/128 (edge-row masking +
    # analytic ln2 column correction), grad_clip on.
    N2, C2 = 10, 36
    logits2 = jax.random.normal(k3, (N2, C2), dtype=jnp.float32)
    labels2 = (jax.random.uniform(k4, (N2, C2)) < 0.5).astype(jnp.float32)
    out2 = jax.block_until_ready(
        balanced_bce_with_logits_loss(logits2, labels2, grad_clip=True))
    ref2 = _reference(logits2, labels2, grad_clip=True)
    assert jnp.allclose(out2, ref2, rtol=1e-5, atol=1e-5), (out2, ref2)

    print("KERNEL_OK")
</pallas_src>

<mosaic_0001>
module attributes {stable_mosaic.version = 11 : i64} {
  func.func @_balanced_bce_kernel(%arg0: i32, %arg1: memref<32x128xf32, #tpu.memory_space<vmem>>, %arg2: memref<32x128xbf16, #tpu.memory_space<vmem>>, %arg3: memref<8x128xf32, #tpu.memory_space<vmem>>) attributes {dimension_semantics = [#tpu.dimension_semantics<parallel>], iteration_bounds = array<i64: 1>, scalar_prefetch = 0 : i64, scratch_operands = 0 : i64, tpu.core_type = #tpu.core_type<tc>, window_params = [{transform_indices = @transform_0, window_bounds = array<i64: 32, 128>}, {transform_indices = @transform_1, window_bounds = array<i64: 32, 128>}, {transform_indices = @transform_2, window_bounds = array<i64: 8, 128>}]} {
    %c0 = arith.constant 0 : index
    %c0_0 = arith.constant 0 : index
    %0 = vector.load %arg1[%c0, %c0_0] : memref<32x128xf32, #tpu.memory_space<vmem>>, vector<32x128xf32>
    %c0_1 = arith.constant 0 : index
    %c0_2 = arith.constant 0 : index
    %1 = vector.load %arg2[%c0_1, %c0_2] : memref<32x128xbf16, #tpu.memory_space<vmem>>, vector<32x128xbf16>
    %2 = arith.extf %1 : vector<32x128xbf16> to vector<32x128xf32>
    %cst = arith.constant 1.000000e+00 : bf16
    %3 = vector.broadcast %cst : bf16 to vector<128x128xbf16>
    %cst_3 = arith.constant dense<0.000000e+00> : vector<32x128xf32>
    %4 = tpu.matmul %1, %3, %cst_3 {dimension_numbers = #tpu.dot_dimension_numbers<[1], [0], [0], [1], [0, 0, 1, 1], [], []>} : vector<32x128xbf16>, vector<128x128xbf16>, vector<32x128xf32> -> vector<32x128xf32>
    %cst_4 = arith.constant 0.000000e+00 : f32
    %5 = vector.broadcast %cst_4 : f32 to vector<32x128xf32>
    %6 = arith.cmpf oeq, %4, %5 : vector<32x128xf32>
    %cst_5 = arith.constant 3.200000e+01 : f32
    %7 = vector.broadcast %cst_5 : f32 to vector<32x128xf32>
    %8 = arith.subf %7, %4 : vector<32x128xf32>
    %cst_6 = arith.constant 0.000000e+00 : f32
    %9 = vector.broadcast %cst_6 : f32 to vector<32x128xf32>
    %10 = arith.cmpf oeq, %4, %9 : vector<32x128xf32>
    %cst_7 = arith.constant 1.000000e+00 : f32
    %11 = vector.broadcast %cst_7 : f32 to vector<32x128xf32>
    %12 = arith.select %10, %11, %4 : vector<32x128xi1>, vector<32x128xf32>
    %13 = arith.divf %8, %12 : vector<32x128xf32>
    %cst_8 = arith.constant 0.000000e+00 : f32
    %14 = vector.broadcast %cst_8 : f32 to vector<32x128xf32>
    %15 = arith.select %6, %14, %13 : vector<32x128xi1>, vector<32x128xf32>
    %16 = math.absf %0 : vector<32x128xf32>
    %cst_9 = arith.constant 0.000000e+00 : f32
    %17 = vector.broadcast %cst_9 : f32 to vector<32x128xf32>
    %18 = arith.subf %17, %16 : vector<32x128xf32>
    %19 = math.exp %18 : vector<32x128xf32>
    %cst_10 = arith.constant 1.000000e+00 : f32
    %20 = vector.broadcast %cst_10 : f32 to vector<32x128xf32>
    %21 = arith.addf %20, %19 : vector<32x128xf32>
    %22 = math.log %21 : vector<32x128xf32>
    %cst_11 = arith.constant 0.000000e+00 : f32
    %23 = vector.broadcast %cst_11 : f32 to vector<32x128xf32>
    %24 = arith.subf %23, %0 : vector<32x128xf32>
    %cst_12 = arith.constant 0.000000e+00 : f32
    %25 = vector.broadcast %cst_12 : f32 to vector<32x128xf32>
    %26 = arith.maximumf %24, %25 : vector<32x128xf32>
    %27 = arith.addf %26, %22 : vector<32x128xf32>
    %28 = arith.mulf %2, %27 : vector<32x128xf32>
    %cst_13 = arith.constant 1.000000e+00 : f32
    %29 = vector.broadcast %cst_13 : f32 to vector<32x128xf32>
    %30 = arith.subf %29, %2 : vector<32x128xf32>
    %cst_14 = arith.constant 0.000000e+00 : f32
    %31 = vector.broadcast %cst_14 : f32 to vector<32x128xf32>
    %32 = arith.maximumf %0, %31 : vector<32x128xf32>
    %33 = arith.addf %32, %22 : vector<32x128xf32>
    %34 = arith.mulf %30, %33 : vector<32x128xf32>
    %35 = arith.mulf %28, %15 : vector<32x128xf32>
    %36 = arith.addf %35, %34 : vector<32x128xf32>
    %c32_i32 = arith.constant 32 : i32
    %37 = arith.muli %arg0, %c32_i32 : i32
    %38 = tpu.iota {dimensions = array<i32: 0>} : vector<32x128xi32>
    %39 = vector.broadcast %37 : i32 to vector<32x128xi32>
    %40 = arith.addi %39, %38 : vector<32x128xi32>
    %c16_i32 = arith.constant 16 : i32
    %41 = vector.broadcast %c16_i32 : i32 to vector<32x128xi32>
    %42 = arith.cmpi slt, %40, %41 : vector<32x128xi32>
    %cst_15 = arith.constant 0.000000e+00 : f32
    %43 = vector.broadcast %cst_15 : f32 to vector<32x128xf32>
    %44 = arith.select %42, %36, %43 : vector<32x128xi1>, vector<32x128xf32>
    %45 = vector.extract_strided_slice %44 {offsets = [0, 0], sizes = [8, 128], strides = [1, 1]} : vector<32x128xf32> to vector<8x128xf32>
    %46 = vector.extract_strided_slice %44 {offsets = [8, 0], sizes = [8, 128], strides = [1, 1]} : vector<32x128xf32> to vector<8x128xf32>
    %47 = vector.extract_strided_slice %44 {offsets = [16, 0], sizes = [8, 128], strides = [1, 1]} : vector<32x128xf32> to vector<8x128xf32>
    %48 = vector.extract_strided_slice %44 {offsets = [24, 0], sizes = [8, 128], strides = [1, 1]} : vector<32x128xf32> to vector<8x128xf32>
    %49 = arith.addf %45, %46 : vector<8x128xf32>
    %50 = arith.addf %49, %47 : vector<8x128xf32>
    %51 = arith.addf %50, %48 : vector<8x128xf32>
    %c0_16 = arith.constant 0 : index
    %c0_17 = arith.constant 0 : index
    %52 = vector.load %arg3[%c0_16, %c0_17] : memref<8x128xf32, #tpu.memory_space<vmem>>, vector<8x128xf32>
    tpu.vector_store %arg3[%c0_16, %c0_17], %51 {strides = array<i32>} : memref<8x128xf32, #tpu.memory_space<vmem>>, vector<8x128xf32>,
    return
  }
  func.func @transform_0(%arg0: i32) -> (i32, i32) {
    %c0_i32 = arith.constant 0 : i32
    %c0_i32_0 = arith.constant 0 : i32
    return %arg0, %c0_i32 : i32, i32
  }
  func.func @transform_1(%arg0: i32) -> (i32, i32) {
    %c0_i32 = arith.constant 0 : i32
    %c0_i32_0 = arith.constant 0 : i32
    return %arg0, %c0_i32 : i32, i32
  }
  func.func @transform_2(%arg0: i32) -> (i32, i32) {
    %c0_i32 = arith.constant 0 : i32
    %c0_i32_0 = arith.constant 0 : i32
    return %arg0, %c0_i32 : i32, i32
  }
}

</mosaic_0001>

<bundles_post_ra>
// kernel: tpu_custom_call.1
= control target key start
LH: loop header
LB: loop body
LE: loop exit
PB: predicated region body
PF: predicated region fallthrough
CT: control target
= control target key end

     0   :  { %7 = vsyncpa [#allocation3], 0  ;;  %s408_s0 = inlined_call_operand.hbm [shape: f32[16,128], index: 0, kind: input, shape index: {}]   ;;  %s409_s1 = inlined_call_operand.hbm [shape: bf16[16,128], index: 1, kind: input, shape index: {}]   ;;  %s410_s2 = inlined_call_operand.hbm [shape: f32[8,128], index: 2, kind: output, shape index: {}]  }
   0x1   :  { %8 = vsyncpa [#allocation6], 0 }
   0x2   :  { %9 = vsyncpa [#allocation4], 0 }
   0x3   :  { %14 = vsyncadd [#allocation3], 256  ;;  %s367_s9 = smov [#allocation2]  }
   0x4   :  { %s15_s10 = sshll.u32 %s367_s9, 4  ;;  %s16_s10 = int_to_ptr.vmem [resolvable:$true] %s15_s10 }
   0x5   :  { %s309_s11 = scalar_lea.vmem %s16_s10, 256  ;;  %s313_s12 = scalar_lea.vmem %s16_s10, 512 }
   0x6   :  { %p310_p0 = scmp.ne.s32.totalorder %s16_s10, %s309_s11  ;;  %p314_p1 = scmp.lt.s32.totalorder %s16_s10, %s16_s10 }
   0x7   :  { %p315_p2 = scmp.lt.s32.totalorder %s313_s12, %s309_s11 }
   0x9   :  { %p316_p3 = por %p315_p2, %p314_p1 }
   0xb   :  { %p317_p4 = pnand %p316_p3, %p310_p0 }
   0xd   :  { %320 = shalt.err (!%p317_p4)
}
   0xe   :  { %s368_s13 = smov 128   ;;  %s369_s14 = smov 8  }
   0xf   :  { %21 = dma.hbm_to_vmem [thread:$0]  %s408_s0, 256, %s16_s10, [#allocation3], %s368_s13, %s368_s13, %s369_s14  }
  0x10   :  { %26 = vsyncadd [#allocation6], 128  ;;  %s370_s17 = smov [#allocation5]  }
  0x11   :  { %s27_s18 = sshll.u32 %s370_s17, 4  ;;  %s28_s18 = int_to_ptr.vmem [resolvable:$true] %s27_s18 }
  0x12   :  { %s329_s19 = scalar_lea.vmem %s28_s18, 128  ;;  %s333_s20 = scalar_lea.vmem %s28_s18, 256 }
  0x13   :  { %p330_p5 = scmp.ne.s32.totalorder %s28_s18, %s329_s19  ;;  %p334_p6 = scmp.lt.s32.totalorder %s28_s18, %s28_s18 }
  0x14   :  { %p335_p7 = scmp.lt.s32.totalorder %s333_s20, %s329_s19 }
  0x16   :  { %p336_p8 = por %p335_p7, %p334_p6 }
  0x18   :  { %p337_p9 = pnand %p336_p8, %p330_p5 }
  0x1a   :  { %340 = shalt.err (!%p337_p9)
}
  0x1b   :  { %s371_s21 = smov 64   ;;  %s372_s22 = smov 4  }
  0x1c   :  { %33 = dma.hbm_to_vmem [thread:$0]  %s409_s1, 128, %s28_s18, [#allocation6], %s371_s21, %s371_s21, %s372_s22  }
  0x1d   :  { %361 = dma.done.wait [#allocation3], 512  }
  0x1e   :  { %362 = vsyncadd [#allocation3], 4294966784 }
  0x1f   :  { %363 = dma.done.wait [#allocation6], 256  }
  0x20   :  { %364 = vsyncadd [#allocation6], 4294967040  ;;  %v373_v0 = vmov 1065369472   ;;  %v396_v1 = vld [vmem:[#allocation5] sm:$0xff]   ;;  %v287_v2 = vld [vmem:[#allocation5 + $0x8] sm:$0xff]  }
  0x21   :  { %258 = vmatprep.subr.bf16.mxu0 %v373_v0  ;;  %274 = vmatprep.mubr.bf16.mxu0 %v396_v1  ;;  %v42_v3 = vld [vmem:[#allocation2] sm:$0xff]  ;;  %v43_v4 = vld [vmem:[#allocation2 + $0x8] sm:$0xff]  ;;  %v50_v29 = vunpack.c.l.bf16 %v396_v1  ;;  %v51_v30 = vunpack.c.h.bf16 %v396_v1  ;;  %s374_s0 = smov [#allocation7]  }
  0x22   :  { %259 = vmatpush3.bf16.msra.mxu0 %v373_v0  ;;  %v139_v5 = vand.u32 2147483647, %v42_v3  ;;  %v140_v6 = vand.u32 2147483647, %v43_v4  ;;  %v167_v20 = vsub.f32 0.0, %v42_v3  ;;  %v168_v23 = vsub.f32 0.0, %v43_v4 }
  0x23   :  { %260 = vmatprep.subr.bf16.mxu0 %v373_v0  ;;  %v187_v32 = vmax.f32 %v42_v3, 0.0  ;;  %v188_v33 = vmax.f32 %v43_v4, 0.0  ;;  %v183_v37 = vsub.f32 1.0, %v50_v29  ;;  %v184_v40 = vsub.f32 1.0, %v51_v30  ;;  %s236_s1 = sshll.u32 %s374_s0, 4  ;;  %s237_s1 = int_to_ptr.vmem [resolvable:$true] %s236_s1 }
  0x24   :  { %v143_v7 = vsub.f32 0.0, %v139_v5  ;;  %v144_v8 = vsub.f32 0.0, %v140_v6  ;;  %v171_v26 = vmax.f32 %v167_v20, 0.0  ;;  %v172_v28 = vmax.f32 %v168_v23, 0.0  ;;  %s341_s25 = scalar_lea.vmem %s237_s1, 128  ;;  %p346_p11 = scmp.lt.s32.totalorder %s237_s1, %s237_s1 }
  0x25   :  { %p342_p10 = scmp.ne.s32.totalorder %s237_s1, %s341_s25  ;;  %p347_p12 = scmp.lt.s32.totalorder %s341_s25, %s341_s25 }
  0x26   :  { %261 = vmatpush3.bf16.msra.mxu0 %v373_v0  ;;  %v147_v9 = vmul.f32 1.442695, %v143_v7  ;;  %v149_v10 = vmul.f32 1.442695, %v144_v8 }
  0x27   :  { %262 = vmatprep.subr.bf16.mxu0 %v373_v0  ;;  %p348_p13 = por %p347_p12, %p346_p11 }
  0x28   :  { %289 = vpow2.f32 %v147_v9 }
  0x29   :  { %291 = vpow2.f32 %v149_v10  ;;  %p349_p0 = pnand %p348_p13, %p342_p10 }
  0x2a   :  { %263 = vmatpush3.bf16.msra.mxu0 %v373_v0 }
  0x2b   :  { %264 = vmatprep.subr.bf16.mxu0 %v373_v0 }
  0x2e   :  { %265 = vmatpush3.bf16.msra.mxu0 %v373_v0 }
  0x2f   :  { %266 = vmatprep.subr.bf16.mxu0 %v373_v0 }
  0x32   :  { %267 = vmatpush3.bf16.msra.mxu0 %v373_v0 }
  0x33   :  { %268 = vmatprep.subr.bf16.mxu0 %v373_v0 }
  0x35   :  { %v290_v11 = vpop.eup %289 }
  0x36   :  { %269 = vmatpush3.bf16.msra.mxu0 %v373_v0  ;;  %v292_v12 = vpop.eup %291  ;;  %v155_v13 = vadd.f32 1.0, %v290_v11 }
  0x37   :  { %270 = vmatprep.subr.bf16.mxu0 %v373_v0  ;;  %v156_v14 = vadd.f32 1.0, %v292_v12 }
  0x38   :  { %293 = vlog2.f32 %v155_v13 }
  0x39   :  { %295 = vlog2.f32 %v156_v14 }
  0x3a   :  { %271 = vmatpush3.bf16.msra.mxu0 %v373_v0 }
  0x3b   :  { %272 = vmatprep.subr.bf16.mxu0 %v373_v0 }
  0x3e   :  { %273 = vmatpush3.bf16.msra.mxu0 %v373_v0 }
  0x41   :  { %275 = vmatmul.mubr.bf16.vlgmr.msra.gmra.mxu0 %v287_v2 }
  0x45   :  { %v294_v22 = vpop.eup %293 }
  0x46   :  { %v296_v24 = vpop.eup %295  ;;  %v160_v25 = vmul.f32 0.6931472, %v294_v22 }
  0x47   :  { %v162_v27 = vmul.f32 0.6931472, %v296_v24 }
  0x48   :  { %v175_v31 = vadd.f32 %v171_v26, %v160_v25  ;;  %v191_v41 = vadd.f32 %v187_v32, %v160_v25 }
  0x49   :  { %v176_v36 = vadd.f32 %v172_v28, %v162_v27  ;;  %v192_v42 = vadd.f32 %v188_v33, %v162_v27 }
  0x4a   :  { %v179_v39 = vmul.f32 %v175_v31, %v50_v29  ;;  %v195_v48 = vmul.f32 %v191_v41, %v183_v37 }
  0x4b   :  { %v180_v46 = vmul.f32 %v176_v36, %v51_v30  ;;  %v196_v49 = vmul.f32 %v192_v42, %v184_v40 }
 0x101   :  { %v276_v15 = vpop.f32.mrf.mxu0 }
 0x103   :  { %v100_v16 = vpop.f32.mrf.mxu0 }
 0x104   :  { %vm115_vm0 = vcmp.eq.f32.partialorder %v100_v16, 0.0  ;;  %v119_v34 = vsub.f32 32.0, %v100_v16 }
 0x105   :  { %v123_v17 = vsel %vm115_vm0, 1.0, %v100_v16  ;;  %v277_v18 = vpop.f32.mrf.mxu0 }
 0x106   :  { %297 = vrcp.f32 %v123_v17 }
 0x107   :  { %v103_v19 = vpop.f32.mrf.mxu0 }
 0x108   :  { %vm116_vm1 = vcmp.eq.f32.partialorder %v103_v19, 0.0  ;;  %v120_v44 = vsub.f32 32.0, %v103_v19 }
 0x109   :  { %v124_v21 = vsel %vm116_vm1, 1.0, %v103_v19 }
 0x10a   :  { %299 = vrcp.f32 %v124_v21 }
 0x113   :  { %v298_v35 = vpop.eup %297 }
 0x114   :  { %v128_v38 = vmul.f32 %v298_v35, %v119_v34 }
 0x116   :  { %v135_v43 = vsel %vm115_vm0, 0.0, %v128_v38 }
 0x117   :  { %v300_v45 = vpop.eup %299  ;;  %v199_v50 = vmul.f32 %v179_v39, %v135_v43 }
 0x118   :  { %v130_v47 = vmul.f32 %v300_v45, %v120_v44 }
 0x119   :  { %v203_v53 = vadd.f32 %v199_v50, %v195_v48 }
 0x11a   :  { %v136_v51 = vsel %vm116_vm1, 0.0, %v130_v47 }
 0x11b   :  { %v200_v52 = vmul.f32 %v180_v46, %v136_v51 }
 0x11d   :  { %v204_v54 = vadd.f32 %v200_v52, %v196_v49 }
 0x11f   :  { %v226_v55 = vadd.f32 %v204_v54, %v203_v53 }
 0x121   :  { %229 = vst [vmem:[#allocation7] sm:$0xff] %v226_v55 }
 0x122   :  { %352 = shalt.err (!%p349_p0)
}
 0x123   :  { %239 = dma.vmem_to_hbm [thread:$0]  %s237_s1, 128, %s410_s2, [#allocation4]  }
 0x124   :  { %365 = dma.done.wait [#allocation4], 128  }
 0x125   :  { %366 = vsyncadd [#allocation4], 4294967168 }
 0x126   :  { %243 = vsyncpa [#allocation3], 1 }
 0x127   :  { %244 = vsyncpa [#allocation6], 1 }
 0x128   :  { %245 = vsyncpa [#allocation4], 1 }

</bundles_post_ra>
